<compile_context>
chip_gen: v6e
topology: v6e:2x2x1
jax: 0.10.0
libtpu: 0.0.40
codegen_flags: <defaults>
</compile_context>

<pallas_src>
import functools

import jax
import jax.numpy as jnp
from jax import lax
from jax.experimental import pallas as pl
from jax.experimental.pallas import tpu as pltpu


def _round_up(n, m):
    return ((n + m - 1) // m) * m


def snn_kernel(x_ref, w1_ref, w2_ref, out_ref, *, time_steps, threshold, decay,
               unroll):
    """One batch tile; the whole SNN time loop runs in VMEM.

    x_ref  : (TB, Dp)  input activations, matmul dtype (bf16), bias lane = 1
    w1_ref : (Dp, Hp)  fc1 weight pre-transposed, bias folded into row D (resident)
    w2_ref : (Hp, Dp)  fc2 weight pre-transposed, bias folded into row H (resident)
    out_ref: (TB, Dp)  spike rate = spike_count / time_steps (f32)
    """
    tb, dp = out_ref.shape
    mxu_dtype = w1_ref.dtype

    w1 = w1_ref[...]
    w2 = w2_ref[...]

    x0 = x_ref[...].astype(jnp.float32)
    mem0 = jnp.zeros((tb, dp), jnp.float32)
    cnt0 = jnp.zeros((tb, dp), jnp.float32)

    def body(_, carry):
        x, mem, cnt = carry
        # fc1 -> relu -> fc2 : bf16 MXU inputs, f32 accumulation.
        # Biases are applied by the MXU via the constant-1 lane folded into the
        # padded weight rows, so there are no '+ b' VPU ops here.
        h = jnp.dot(x.astype(mxu_dtype), w1, preferred_element_type=jnp.float32)
        h = jnp.maximum(h, 0.0)
        y = jnp.dot(h.astype(mxu_dtype), w2, preferred_element_type=jnp.float32)
        # LIF membrane update (f32 on the VPU): compare once, select, count.
        mem = mem * decay + y
        spike = mem >= threshold
        cnt = cnt + spike.astype(jnp.float32)
        mem = jnp.where(spike, 0.0, mem)
        # NOTE: original PyTorch code reassigns x each step -> carry y forward.
        return (y, mem, cnt)

    _, _, cnt = lax.fori_loop(0, time_steps, body, (x0, mem0, cnt0),
                              unroll=unroll)

    out_ref[...] = (cnt * (1.0 / float(time_steps))).astype(out_ref.dtype)


def snn_forward(x, w1, b1, w2, b2, *, time_steps=10, threshold=0.5, decay=0.2,
                matmul_dtype=jnp.bfloat16, lane=128, max_batch_tile=128):
    """x: (B, D); w1: (D, H); b1: (1, H) or (H,); w2: (H, D); b2: (1, D) or (D,).

    Weights are stored pre-transposed (in_features, out_features) so the hot
    path is plain `x @ W`.  Requires D == output_size (see module note).
    """
    B, D = x.shape
    Din, H = w1.shape
    assert Din == D and w2.shape == (H, D), "requires input_size == output_size"

    # Lane-dense padding; reserve at least one spare column for the bias lane.
    Dp = _round_up(D + 1, lane)
    Hp = _round_up(H + 1, lane)

    # Batch tile: >= 2 grid tiles when B >= 16 so v7x's second TensorCore gets
    # work (dimension_semantics "parallel" shards the grid across cores).
    Bp8 = _round_up(B, 8)
    if B >= 16:
        TB = min(max_batch_tile, _round_up((Bp8 + 1) // 2, 8))
    else:
        TB = min(max_batch_tile, Bp8)
    Bp = _round_up(B, TB)

    # --- bias fold into the padded weight rows via a constant-1 lane ----------
    xp = jnp.zeros((Bp, Dp), jnp.float32)
    xp = xp.at[:B, :D].set(x.astype(jnp.float32))
    xp = xp.at[:, D].set(1.0)                       # bias lane (padded column)
    xp = xp.astype(matmul_dtype)                    # bf16 input: halves x DMA

    w1p = jnp.zeros((Dp, Hp), jnp.float32)
    w1p = w1p.at[:D, :H].set(w1.astype(jnp.float32))
    w1p = w1p.at[D, :H].set(b1.reshape(H).astype(jnp.float32))
    w1p = w1p.at[D, H].set(1.0)                     # propagate 1-lane to hidden
    w1p = w1p.astype(matmul_dtype)

    w2p = jnp.zeros((Hp, Dp), jnp.float32)
    w2p = w2p.at[:H, :D].set(w2.astype(jnp.float32))
    w2p = w2p.at[H, :D].set(b2.reshape(D).astype(jnp.float32))
    w2p = w2p.at[H, D].set(1.0)                     # regenerate 1-lane in output
    w2p = w2p.astype(matmul_dtype)

    # Full time-loop unroll only while the live carry set (y/mem/cnt + h)
    # comfortably fits the 64-vreg file; otherwise unroll=2.
    live_vregs = (TB // 8) * (3 * (Dp // 128) + (Hp // 128))
    unroll = True if live_vregs <= 40 else 2

    # VMEM budget: Pallas double-buffers every input (weights included, since we
    # do not override pipeline_mode), plus the x/out tiles and in-kernel carries.
    itemsize = jnp.dtype(matmul_dtype).itemsize
    weights_bytes = 2 * (w1p.size + w2p.size) * itemsize      # 2x double-buffer
    io_tiles_bytes = 2 * TB * Dp * (itemsize + 4)             # 2x x(bf16) + out(f32)
    scratch_bytes = TB * (3 * Dp + Hp) * 4                    # y/mem/cnt + hidden
    vmem_need = weights_bytes + io_tiles_bytes + scratch_bytes
    try:
        info = pltpu.get_tpu_info()
        vmem_cap = int(getattr(info, "vmem_capacity_bytes", 64 << 20))
    except Exception:
        vmem_cap = 64 << 20                                    # conservative (v7x)
    vmem_limit = int(min(int(0.8 * vmem_cap), max(32 << 20, 2 * vmem_need)))

    kernel = functools.partial(
        snn_kernel, time_steps=time_steps, threshold=threshold, decay=decay,
        unroll=unroll)

    out = pl.pallas_call(
        kernel,
        out_shape=jax.ShapeDtypeStruct((Bp, Dp), jnp.float32),
        grid_spec=pltpu.PrefetchScalarGridSpec(
            num_scalar_prefetch=0,
            grid=(Bp // TB,),
            in_specs=[
                pl.BlockSpec((TB, Dp), lambda i: (i, 0)),   # x: per-batch-tile
                pl.BlockSpec((Dp, Hp), lambda i: (0, 0)),   # w1 (+b1 row): resident
                pl.BlockSpec((Hp, Dp), lambda i: (0, 0)),   # w2 (+b2 row): resident
            ],
            out_specs=pl.BlockSpec((TB, Dp), lambda i: (i, 0)),
        ),
        compiler_params=pltpu.CompilerParams(
            dimension_semantics=("parallel",),
            vmem_limit_bytes=vmem_limit,
        ),
    )(xp, w1p, w2p)

    return out[:B, :D]


def snn_reference(x, w1, b1, w2, b2, *, time_steps=10, threshold=0.5, decay=0.2,
                  matmul_dtype=jnp.float32):
    """Pure-JAX reference mirroring the PyTorch forward.

    With matmul_dtype=float32 this is exact PyTorch semantics; with bfloat16 it
    applies the same MXU-input rounding (weights, activations and — because the
    kernel folds them into the weight matrix — biases) so the spike thresholding
    is compared like-for-like.
    """
    B, D = x.shape
    b1 = b1.reshape(1, -1).astype(matmul_dtype).astype(jnp.float32)
    b2 = b2.reshape(1, -1).astype(matmul_dtype).astype(jnp.float32)
    mem = jnp.zeros((B, D), jnp.float32)
    cnt = jnp.zeros((B, D), jnp.float32)
    for _ in range(time_steps):
        h = jnp.dot(x.astype(matmul_dtype), w1.astype(matmul_dtype),
                    preferred_element_type=jnp.float32) + b1
        h = jnp.maximum(h, 0.0)
        x = jnp.dot(h.astype(matmul_dtype), w2.astype(matmul_dtype),
                    preferred_element_type=jnp.float32) + b2
        mem = mem * decay + x
        spike = (mem >= threshold).astype(jnp.float32)
        mem = mem * (1.0 - spike)
        cnt = cnt + spike
    return cnt / time_steps


if __name__ == "__main__":
    # Small shapes consistent with the module (input_size must equal output_size
    # because the original forward carries x through fc2 back into fc1).
    batch, input_size, hidden_size, output_size = 8, 16, 32, 16
    time_steps, threshold, decay = 10, 0.5, 0.2

    key = jax.random.PRNGKey(0)
    kx, kw1, kb1, kw2, kb2 = jax.random.split(key, 5)

    # Deterministic PyTorch-style init: U(-1/sqrt(fan_in), 1/sqrt(fan_in)).
    lim1 = 1.0 / (input_size ** 0.5)
    lim2 = 1.0 / (hidden_size ** 0.5)
    x = jax.random.normal(kx, (batch, input_size), jnp.float32)
    w1 = jax.random.uniform(kw1, (input_size, hidden_size), jnp.float32, -lim1, lim1)
    b1 = jax.random.uniform(kb1, (1, hidden_size), jnp.float32, -lim1, lim1)
    w2 = jax.random.uniform(kw2, (hidden_size, output_size), jnp.float32, -lim2, lim2)
    b2 = jax.random.uniform(kb2, (1, output_size), jnp.float32, -lim2, lim2)

    out = snn_forward(x, w1, b1, w2, b2,
                      time_steps=time_steps, threshold=threshold, decay=decay)
    out = jax.block_until_ready(out)

    # Compare against the reference computed with the same bf16 MXU-input
    # rounding the kernel uses (spike thresholding makes matmul dtype visible).
    ref = snn_reference(x, w1, b1, w2, b2,
                        time_steps=time_steps, threshold=threshold, decay=decay,
                        matmul_dtype=jnp.bfloat16)
    assert out.shape == (batch, output_size)
    assert jnp.allclose(out, ref, atol=1e-3), "mismatch vs pure-JAX reference"
    print("KERNEL_OK")
</pallas_src>

<mosaic_0001>
module attributes {stable_mosaic.version = 11 : i64} {
  func.func @snn_kernel(%arg0: i32, %arg1: memref<8x128xbf16, #tpu.memory_space<vmem>>, %arg2: memref<128x128xbf16, #tpu.memory_space<vmem>>, %arg3: memref<128x128xbf16, #tpu.memory_space<vmem>>, %arg4: memref<8x128xf32, #tpu.memory_space<vmem>>) attributes {dimension_semantics = [#tpu.dimension_semantics<parallel>], iteration_bounds = array<i64: 1>, scalar_prefetch = 0 : i64, scratch_operands = 0 : i64, tpu.core_type = #tpu.core_type<tc>, window_params = [{transform_indices = @transform_0, window_bounds = array<i64: 8, 128>}, {pipeline_mode = #tpu.pipeline_mode<synchronous>, transform_indices = @transform_1, window_bounds = array<i64: 128, 128>}, {pipeline_mode = #tpu.pipeline_mode<synchronous>, transform_indices = @transform_2, window_bounds = array<i64: 128, 128>}, {transform_indices = @transform_3, window_bounds = array<i64: 8, 128>}]} {
    %c0 = arith.constant 0 : index
    %c0_0 = arith.constant 0 : index
    %0 = vector.load %arg2[%c0, %c0_0] : memref<128x128xbf16, #tpu.memory_space<vmem>>, vector<128x128xbf16>
    %c0_1 = arith.constant 0 : index
    %c0_2 = arith.constant 0 : index
    %1 = vector.load %arg3[%c0_1, %c0_2] : memref<128x128xbf16, #tpu.memory_space<vmem>>, vector<128x128xbf16>
    %c0_3 = arith.constant 0 : index
    %c0_4 = arith.constant 0 : index
    %2 = vector.load %arg1[%c0_3, %c0_4] : memref<8x128xbf16, #tpu.memory_space<vmem>>, vector<8x128xbf16>
    %3 = arith.extf %2 : vector<8x128xbf16> to vector<8x128xf32>
    %cst = arith.constant 0.000000e+00 : f32
    %4 = vector.broadcast %cst : f32 to vector<8x128xf32>
    %cst_5 = arith.constant 0.000000e+00 : f32
    %5 = vector.broadcast %cst_5 : f32 to vector<8x128xf32>
    %c0_i32 = arith.constant 0 : i32
    %6 = arith.truncf %3 : vector<8x128xf32> to vector<8x128xbf16>
    %cst_6 = arith.constant dense<0.000000e+00> : vector<8x128xf32>
    %7 = tpu.matmul %6, %0, %cst_6 {dimension_numbers = #tpu.dot_dimension_numbers<[1], [0], [0], [1], [0, 0, 1, 1], [], []>} : vector<8x128xbf16>, vector<128x128xbf16>, vector<8x128xf32> -> vector<8x128xf32>
    %cst_7 = arith.constant 0.000000e+00 : f32
    %8 = vector.broadcast %cst_7 : f32 to vector<8x128xf32>
    %9 = arith.maximumf %7, %8 : vector<8x128xf32>
    %10 = arith.truncf %9 : vector<8x128xf32> to vector<8x128xbf16>
    %cst_8 = arith.constant dense<0.000000e+00> : vector<8x128xf32>
    %11 = tpu.matmul %10, %1, %cst_8 {dimension_numbers = #tpu.dot_dimension_numbers<[1], [0], [0], [1], [0, 0, 1, 1], [], []>} : vector<8x128xbf16>, vector<128x128xbf16>, vector<8x128xf32> -> vector<8x128xf32>
    %cst_9 = arith.constant 2.000000e-01 : f32
    %12 = vector.broadcast %cst_9 : f32 to vector<8x128xf32>
    %13 = arith.mulf %4, %12 : vector<8x128xf32>
    %14 = arith.addf %13, %11 : vector<8x128xf32>
    %cst_10 = arith.constant 5.000000e-01 : f32
    %15 = vector.broadcast %cst_10 : f32 to vector<8x128xf32>
    %16 = arith.cmpf oge, %14, %15 : vector<8x128xf32>
    %17 = arith.extui %16 : vector<8x128xi1> to vector<8x128xi32>
    %18 = arith.sitofp %17 : vector<8x128xi32> to vector<8x128xf32>
    %19 = arith.addf %5, %18 : vector<8x128xf32>
    %cst_11 = arith.constant 0.000000e+00 : f32
    %20 = vector.broadcast %cst_11 : f32 to vector<8x128xf32>
    %21 = arith.select %16, %20, %14 : vector<8x128xi1>, vector<8x128xf32>
    %c1_i32 = arith.constant 1 : i32
    %22 = arith.truncf %11 : vector<8x128xf32> to vector<8x128xbf16>
    %cst_12 = arith.constant dense<0.000000e+00> : vector<8x128xf32>
    %23 = tpu.matmul %22, %0, %cst_12 {dimension_numbers = #tpu.dot_dimension_numbers<[1], [0], [0], [1], [0, 0, 1, 1], [], []>} : vector<8x128xbf16>, vector<128x128xbf16>, vector<8x128xf32> -> vector<8x128xf32>
    %cst_13 = arith.constant 0.000000e+00 : f32
    %24 = vector.broadcast %cst_13 : f32 to vector<8x128xf32>
    %25 = arith.maximumf %23, %24 : vector<8x128xf32>
    %26 = arith.truncf %25 : vector<8x128xf32> to vector<8x128xbf16>
    %cst_14 = arith.constant dense<0.000000e+00> : vector<8x128xf32>
    %27 = tpu.matmul %26, %1, %cst_14 {dimension_numbers = #tpu.dot_dimension_numbers<[1], [0], [0], [1], [0, 0, 1, 1], [], []>} : vector<8x128xbf16>, vector<128x128xbf16>, vector<8x128xf32> -> vector<8x128xf32>
    %cst_15 = arith.constant 2.000000e-01 : f32
    %28 = vector.broadcast %cst_15 : f32 to vector<8x128xf32>
    %29 = arith.mulf %21, %28 : vector<8x128xf32>
    %30 = arith.addf %29, %27 : vector<8x128xf32>
    %cst_16 = arith.constant 5.000000e-01 : f32
    %31 = vector.broadcast %cst_16 : f32 to vector<8x128xf32>
    %32 = arith.cmpf oge, %30, %31 : vector<8x128xf32>
    %33 = arith.extui %32 : vector<8x128xi1> to vector<8x128xi32>
    %34 = arith.sitofp %33 : vector<8x128xi32> to vector<8x128xf32>
    %35 = arith.addf %19, %34 : vector<8x128xf32>
    %cst_17 = arith.constant 0.000000e+00 : f32
    %36 = vector.broadcast %cst_17 : f32 to vector<8x128xf32>
    %37 = arith.select %32, %36, %30 : vector<8x128xi1>, vector<8x128xf32>
    %c2_i32 = arith.constant 2 : i32
    %38 = arith.truncf %27 : vector<8x128xf32> to vector<8x128xbf16>
    %cst_18 = arith.constant dense<0.000000e+00> : vector<8x128xf32>
    %39 = tpu.matmul %38, %0, %cst_18 {dimension_numbers = #tpu.dot_dimension_numbers<[1], [0], [0], [1], [0, 0, 1, 1], [], []>} : vector<8x128xbf16>, vector<128x128xbf16>, vector<8x128xf32> -> vector<8x128xf32>
    %cst_19 = arith.constant 0.000000e+00 : f32
    %40 = vector.broadcast %cst_19 : f32 to vector<8x128xf32>
    %41 = arith.maximumf %39, %40 : vector<8x128xf32>
    %42 = arith.truncf %41 : vector<8x128xf32> to vector<8x128xbf16>
    %cst_20 = arith.constant dense<0.000000e+00> : vector<8x128xf32>
    %43 = tpu.matmul %42, %1, %cst_20 {dimension_numbers = #tpu.dot_dimension_numbers<[1], [0], [0], [1], [0, 0, 1, 1], [], []>} : vector<8x128xbf16>, vector<128x128xbf16>, vector<8x128xf32> -> vector<8x128xf32>
    %cst_21 = arith.constant 2.000000e-01 : f32
    %44 = vector.broadcast %cst_21 : f32 to vector<8x128xf32>
    %45 = arith.mulf %37, %44 : vector<8x128xf32>
    %46 = arith.addf %45, %43 : vector<8x128xf32>
    %cst_22 = arith.constant 5.000000e-01 : f32
    %47 = vector.broadcast %cst_22 : f32 to vector<8x128xf32>
    %48 = arith.cmpf oge, %46, %47 : vector<8x128xf32>
    %49 = arith.extui %48 : vector<8x128xi1> to vector<8x128xi32>
    %50 = arith.sitofp %49 : vector<8x128xi32> to vector<8x128xf32>
    %51 = arith.addf %35, %50 : vector<8x128xf32>
    %cst_23 = arith.constant 0.000000e+00 : f32
    %52 = vector.broadcast %cst_23 : f32 to vector<8x128xf32>
    %53 = arith.select %48, %52, %46 : vector<8x128xi1>, vector<8x128xf32>
    %c3_i32 = arith.constant 3 : i32
    %54 = arith.truncf %43 : vector<8x128xf32> to vector<8x128xbf16>
    %cst_24 = arith.constant dense<0.000000e+00> : vector<8x128xf32>
    %55 = tpu.matmul %54, %0, %cst_24 {dimension_numbers = #tpu.dot_dimension_numbers<[1], [0], [0], [1], [0, 0, 1, 1], [], []>} : vector<8x128xbf16>, vector<128x128xbf16>, vector<8x128xf32> -> vector<8x128xf32>
    %cst_25 = arith.constant 0.000000e+00 : f32
    %56 = vector.broadcast %cst_25 : f32 to vector<8x128xf32>
    %57 = arith.maximumf %55, %56 : vector<8x128xf32>
    %58 = arith.truncf %57 : vector<8x128xf32> to vector<8x128xbf16>
    %cst_26 = arith.constant dense<0.000000e+00> : vector<8x128xf32>
    %59 = tpu.matmul %58, %1, %cst_26 {dimension_numbers = #tpu.dot_dimension_numbers<[1], [0], [0], [1], [0, 0, 1, 1], [], []>} : vector<8x128xbf16>, vector<128x128xbf16>, vector<8x128xf32> -> vector<8x128xf32>
    %cst_27 = arith.constant 2.000000e-01 : f32
    %60 = vector.broadcast %cst_27 : f32 to vector<8x128xf32>
    %61 = arith.mulf %53, %60 : vector<8x128xf32>
    %62 = arith.addf %61, %59 : vector<8x128xf32>
    %cst_28 = arith.constant 5.000000e-01 : f32
    %63 = vector.broadcast %cst_28 : f32 to vector<8x128xf32>
    %64 = arith.cmpf oge, %62, %63 : vector<8x128xf32>
    %65 = arith.extui %64 : vector<8x128xi1> to vector<8x128xi32>
    %66 = arith.sitofp %65 : vector<8x128xi32> to vector<8x128xf32>
    %67 = arith.addf %51, %66 : vector<8x128xf32>
    %cst_29 = arith.constant 0.000000e+00 : f32
    %68 = vector.broadcast %cst_29 : f32 to vector<8x128xf32>
    %69 = arith.select %64, %68, %62 : vector<8x128xi1>, vector<8x128xf32>
    %c4_i32 = arith.constant 4 : i32
    %70 = arith.truncf %59 : vector<8x128xf32> to vector<8x128xbf16>
    %cst_30 = arith.constant dense<0.000000e+00> : vector<8x128xf32>
    %71 = tpu.matmul %70, %0, %cst_30 {dimension_numbers = #tpu.dot_dimension_numbers<[1], [0], [0], [1], [0, 0, 1, 1], [], []>} : vector<8x128xbf16>, vector<128x128xbf16>, vector<8x128xf32> -> vector<8x128xf32>
    %cst_31 = arith.constant 0.000000e+00 : f32
    %72 = vector.broadcast %cst_31 : f32 to vector<8x128xf32>
    %73 = arith.maximumf %71, %72 : vector<8x128xf32>
    %74 = arith.truncf %73 : vector<8x128xf32> to vector<8x128xbf16>
    %cst_32 = arith.constant dense<0.000000e+00> : vector<8x128xf32>
    %75 = tpu.matmul %74, %1, %cst_32 {dimension_numbers = #tpu.dot_dimension_numbers<[1], [0], [0], [1], [0, 0, 1, 1], [], []>} : vector<8x128xbf16>, vector<128x128xbf16>, vector<8x128xf32> -> vector<8x128xf32>
    %cst_33 = arith.constant 2.000000e-01 : f32
    %76 = vector.broadcast %cst_33 : f32 to vector<8x128xf32>
    %77 = arith.mulf %69, %76 : vector<8x128xf32>
    %78 = arith.addf %77, %75 : vector<8x128xf32>
    %cst_34 = arith.constant 5.000000e-01 : f32
    %79 = vector.broadcast %cst_34 : f32 to vector<8x128xf32>
    %80 = arith.cmpf oge, %78, %79 : vector<8x128xf32>
    %81 = arith.extui %80 : vector<8x128xi1> to vector<8x128xi32>
    %82 = arith.sitofp %81 : vector<8x128xi32> to vector<8x128xf32>
    %83 = arith.addf %67, %82 : vector<8x128xf32>
    %cst_35 = arith.constant 0.000000e+00 : f32
    %84 = vector.broadcast %cst_35 : f32 to vector<8x128xf32>
    %85 = arith.select %80, %84, %78 : vector<8x128xi1>, vector<8x128xf32>
    %c5_i32 = arith.constant 5 : i32
    %86 = arith.truncf %75 : vector<8x128xf32> to vector<8x128xbf16>
    %cst_36 = arith.constant dense<0.000000e+00> : vector<8x128xf32>
    %87 = tpu.matmul %86, %0, %cst_36 {dimension_numbers = #tpu.dot_dimension_numbers<[1], [0], [0], [1], [0, 0, 1, 1], [], []>} : vector<8x128xbf16>, vector<128x128xbf16>, vector<8x128xf32> -> vector<8x128xf32>
    %cst_37 = arith.constant 0.000000e+00 : f32
    %88 = vector.broadcast %cst_37 : f32 to vector<8x128xf32>
    %89 = arith.maximumf %87, %88 : vector<8x128xf32>
    %90 = arith.truncf %89 : vector<8x128xf32> to vector<8x128xbf16>
    %cst_38 = arith.constant dense<0.000000e+00> : vector<8x128xf32>
    %91 = tpu.matmul %90, %1, %cst_38 {dimension_numbers = #tpu.dot_dimension_numbers<[1], [0], [0], [1], [0, 0, 1, 1], [], []>} : vector<8x128xbf16>, vector<128x128xbf16>, vector<8x128xf32> -> vector<8x128xf32>
    %cst_39 = arith.constant 2.000000e-01 : f32
    %92 = vector.broadcast %cst_39 : f32 to vector<8x128xf32>
    %93 = arith.mulf %85, %92 : vector<8x128xf32>
    %94 = arith.addf %93, %91 : vector<8x128xf32>
    %cst_40 = arith.constant 5.000000e-01 : f32
    %95 = vector.broadcast %cst_40 : f32 to vector<8x128xf32>
    %96 = arith.cmpf oge, %94, %95 : vector<8x128xf32>
    %97 = arith.extui %96 : vector<8x128xi1> to vector<8x128xi32>
    %98 = arith.sitofp %97 : vector<8x128xi32> to vector<8x128xf32>
    %99 = arith.addf %83, %98 : vector<8x128xf32>
    %cst_41 = arith.constant 0.000000e+00 : f32
    %100 = vector.broadcast %cst_41 : f32 to vector<8x128xf32>
    %101 = arith.select %96, %100, %94 : vector<8x128xi1>, vector<8x128xf32>
    %c6_i32 = arith.constant 6 : i32
    %102 = arith.truncf %91 : vector<8x128xf32> to vector<8x128xbf16>
    %cst_42 = arith.constant dense<0.000000e+00> : vector<8x128xf32>
    %103 = tpu.matmul %102, %0, %cst_42 {dimension_numbers = #tpu.dot_dimension_numbers<[1], [0], [0], [1], [0, 0, 1, 1], [], []>} : vector<8x128xbf16>, vector<128x128xbf16>, vector<8x128xf32> -> vector<8x128xf32>
    %cst_43 = arith.constant 0.000000e+00 : f32
    %104 = vector.broadcast %cst_43 : f32 to vector<8x128xf32>
    %105 = arith.maximumf %103, %104 : vector<8x128xf32>
    %106 = arith.truncf %105 : vector<8x128xf32> to vector<8x128xbf16>
    %cst_44 = arith.constant dense<0.000000e+00> : vector<8x128xf32>
    %107 = tpu.matmul %106, %1, %cst_44 {dimension_numbers = #tpu.dot_dimension_numbers<[1], [0], [0], [1], [0, 0, 1, 1], [], []>} : vector<8x128xbf16>, vector<128x128xbf16>, vector<8x128xf32> -> vector<8x128xf32>
    %cst_45 = arith.constant 2.000000e-01 : f32
    %108 = vector.broadcast %cst_45 : f32 to vector<8x128xf32>
    %109 = arith.mulf %101, %108 : vector<8x128xf32>
    %110 = arith.addf %109, %107 : vector<8x128xf32>
    %cst_46 = arith.constant 5.000000e-01 : f32
    %111 = vector.broadcast %cst_46 : f32 to vector<8x128xf32>
    %112 = arith.cmpf oge, %110, %111 : vector<8x128xf32>
    %113 = arith.extui %112 : vector<8x128xi1> to vector<8x128xi32>
    %114 = arith.sitofp %113 : vector<8x128xi32> to vector<8x128xf32>
    %115 = arith.addf %99, %114 : vector<8x128xf32>
    %cst_47 = arith.constant 0.000000e+00 : f32
    %116 = vector.broadcast %cst_47 : f32 to vector<8x128xf32>
    %117 = arith.select %112, %116, %110 : vector<8x128xi1>, vector<8x128xf32>
    %c7_i32 = arith.constant 7 : i32
    %118 = arith.truncf %107 : vector<8x128xf32> to vector<8x128xbf16>
    %cst_48 = arith.constant dense<0.000000e+00> : vector<8x128xf32>
    %119 = tpu.matmul %118, %0, %cst_48 {dimension_numbers = #tpu.dot_dimension_numbers<[1], [0], [0], [1], [0, 0, 1, 1], [], []>} : vector<8x128xbf16>, vector<128x128xbf16>, vector<8x128xf32> -> vector<8x128xf32>
    %cst_49 = arith.constant 0.000000e+00 : f32
    %120 = vector.broadcast %cst_49 : f32 to vector<8x128xf32>
    %121 = arith.maximumf %119, %120 : vector<8x128xf32>
    %122 = arith.truncf %121 : vector<8x128xf32> to vector<8x128xbf16>
    %cst_50 = arith.constant dense<0.000000e+00> : vector<8x128xf32>
    %123 = tpu.matmul %122, %1, %cst_50 {dimension_numbers = #tpu.dot_dimension_numbers<[1], [0], [0], [1], [0, 0, 1, 1], [], []>} : vector<8x128xbf16>, vector<128x128xbf16>, vector<8x128xf32> -> vector<8x128xf32>
    %cst_51 = arith.constant 2.000000e-01 : f32
    %124 = vector.broadcast %cst_51 : f32 to vector<8x128xf32>
    %125 = arith.mulf %117, %124 : vector<8x128xf32>
    %126 = arith.addf %125, %123 : vector<8x128xf32>
    %cst_52 = arith.constant 5.000000e-01 : f32
    %127 = vector.broadcast %cst_52 : f32 to vector<8x128xf32>
    %128 = arith.cmpf oge, %126, %127 : vector<8x128xf32>
    %129 = arith.extui %128 : vector<8x128xi1> to vector<8x128xi32>
    %130 = arith.sitofp %129 : vector<8x128xi32> to vector<8x128xf32>
    %131 = arith.addf %115, %130 : vector<8x128xf32>
    %cst_53 = arith.constant 0.000000e+00 : f32
    %132 = vector.broadcast %cst_53 : f32 to vector<8x128xf32>
    %133 = arith.select %128, %132, %126 : vector<8x128xi1>, vector<8x128xf32>
    %c8_i32 = arith.constant 8 : i32
    %134 = arith.truncf %123 : vector<8x128xf32> to vector<8x128xbf16>
    %cst_54 = arith.constant dense<0.000000e+00> : vector<8x128xf32>
    %135 = tpu.matmul %134, %0, %cst_54 {dimension_numbers = #tpu.dot_dimension_numbers<[1], [0], [0], [1], [0, 0, 1, 1], [], []>} : vector<8x128xbf16>, vector<128x128xbf16>, vector<8x128xf32> -> vector<8x128xf32>
    %cst_55 = arith.constant 0.000000e+00 : f32
    %136 = vector.broadcast %cst_55 : f32 to vector<8x128xf32>
    %137 = arith.maximumf %135, %136 : vector<8x128xf32>
    %138 = arith.truncf %137 : vector<8x128xf32> to vector<8x128xbf16>
    %cst_56 = arith.constant dense<0.000000e+00> : vector<8x128xf32>
    %139 = tpu.matmul %138, %1, %cst_56 {dimension_numbers = #tpu.dot_dimension_numbers<[1], [0], [0], [1], [0, 0, 1, 1], [], []>} : vector<8x128xbf16>, vector<128x128xbf16>, vector<8x128xf32> -> vector<8x128xf32>
    %cst_57 = arith.constant 2.000000e-01 : f32
    %140 = vector.broadcast %cst_57 : f32 to vector<8x128xf32>
    %141 = arith.mulf %133, %140 : vector<8x128xf32>
    %142 = arith.addf %141, %139 : vector<8x128xf32>
    %cst_58 = arith.constant 5.000000e-01 : f32
    %143 = vector.broadcast %cst_58 : f32 to vector<8x128xf32>
    %144 = arith.cmpf oge, %142, %143 : vector<8x128xf32>
    %145 = arith.extui %144 : vector<8x128xi1> to vector<8x128xi32>
    %146 = arith.sitofp %145 : vector<8x128xi32> to vector<8x128xf32>
    %147 = arith.addf %131, %146 : vector<8x128xf32>
    %cst_59 = arith.constant 0.000000e+00 : f32
    %148 = vector.broadcast %cst_59 : f32 to vector<8x128xf32>
    %149 = arith.select %144, %148, %142 : vector<8x128xi1>, vector<8x128xf32>
    %c9_i32 = arith.constant 9 : i32
    %150 = arith.truncf %139 : vector<8x128xf32> to vector<8x128xbf16>
    %cst_60 = arith.constant dense<0.000000e+00> : vector<8x128xf32>
    %151 = tpu.matmul %150, %0, %cst_60 {dimension_numbers = #tpu.dot_dimension_numbers<[1], [0], [0], [1], [0, 0, 1, 1], [], []>} : vector<8x128xbf16>, vector<128x128xbf16>, vector<8x128xf32> -> vector<8x128xf32>
    %cst_61 = arith.constant 0.000000e+00 : f32
    %152 = vector.broadcast %cst_61 : f32 to vector<8x128xf32>
    %153 = arith.maximumf %151, %152 : vector<8x128xf32>
    %154 = arith.truncf %153 : vector<8x128xf32> to vector<8x128xbf16>
    %cst_62 = arith.constant dense<0.000000e+00> : vector<8x128xf32>
    %155 = tpu.matmul %154, %1, %cst_62 {dimension_numbers = #tpu.dot_dimension_numbers<[1], [0], [0], [1], [0, 0, 1, 1], [], []>} : vector<8x128xbf16>, vector<128x128xbf16>, vector<8x128xf32> -> vector<8x128xf32>
    %cst_63 = arith.constant 2.000000e-01 : f32
    %156 = vector.broadcast %cst_63 : f32 to vector<8x128xf32>
    %157 = arith.mulf %149, %156 : vector<8x128xf32>
    %158 = arith.addf %157, %155 : vector<8x128xf32>
    %cst_64 = arith.constant 5.000000e-01 : f32
    %159 = vector.broadcast %cst_64 : f32 to vector<8x128xf32>
    %160 = arith.cmpf oge, %158, %159 : vector<8x128xf32>
    %161 = arith.extui %160 : vector<8x128xi1> to vector<8x128xi32>
    %162 = arith.sitofp %161 : vector<8x128xi32> to vector<8x128xf32>
    %163 = arith.addf %147, %162 : vector<8x128xf32>
    %cst_65 = arith.constant 0.000000e+00 : f32
    %164 = vector.broadcast %cst_65 : f32 to vector<8x128xf32>
    %165 = arith.select %160, %164, %158 : vector<8x128xi1>, vector<8x128xf32>
    %cst_66 = arith.constant 1.000000e-01 : f32
    %166 = vector.broadcast %cst_66 : f32 to vector<8x128xf32>
    %167 = arith.mulf %163, %166 : vector<8x128xf32>
    %c0_67 = arith.constant 0 : index
    %c0_68 = arith.constant 0 : index
    %168 = vector.load %arg4[%c0_67, %c0_68] : memref<8x128xf32, #tpu.memory_space<vmem>>, vector<8x128xf32>
    tpu.vector_store %arg4[%c0_67, %c0_68], %167 {strides = array<i32>} : memref<8x128xf32, #tpu.memory_space<vmem>>, vector<8x128xf32>,
    return
  }
  func.func @transform_0(%arg0: i32) -> (i32, i32) {
    %c0_i32 = arith.constant 0 : i32
    %c0_i32_0 = arith.constant 0 : i32
    return %arg0, %c0_i32 : i32, i32
  }
  func.func @transform_1(%arg0: i32) -> (i32, i32) {
    %c0_i32 = arith.constant 0 : i32
    %c0_i32_0 = arith.constant 0 : i32
    %c0_i32_1 = arith.constant 0 : i32
    return %c0_i32, %c0_i32_0 : i32, i32
  }
  func.func @transform_2(%arg0: i32) -> (i32, i32) {
    %c0_i32 = arith.constant 0 : i32
    %c0_i32_0 = arith.constant 0 : i32
    %c0_i32_1 = arith.constant 0 : i32
    return %c0_i32, %c0_i32_0 : i32, i32
  }
  func.func @transform_3(%arg0: i32) -> (i32, i32) {
    %c0_i32 = arith.constant 0 : i32
    %c0_i32_0 = arith.constant 0 : i32
    return %arg0, %c0_i32 : i32, i32
  }
}

</mosaic_0001>

<bundles_post_ra>
// kernel: tpu_custom_call.1
= control target key start
LH: loop header
LB: loop body
LE: loop exit
PB: predicated region body
PF: predicated region fallthrough
CT: control target
= control target key end

     0   :  { %8 = vsyncpa [#allocation3], 0  ;;  %s2271_s0 = inlined_call_operand.hbm [shape: bf16[8,128], index: 0, kind: input, shape index: {}]   ;;  %s2272_s1 = inlined_call_operand.hbm [shape: bf16[128,128], index: 1, kind: input, shape index: {}]   ;;  %s2273_s2 = inlined_call_operand.hbm [shape: bf16[128,128], index: 2, kind: input, shape index: {}]   ;;  %s2274_s3 = inlined_call_operand.hbm [shape: f32[8,128], index: 3, kind: output, shape index: {}]  }
   0x1   :  { %9 = vsyncpa [#allocation6], 0 }
   0x2   :  { %10 = vsyncpa [#allocation4], 0  ;;  %s1815_s12 = smov [#allocation5]  }
   0x3   :  { %s26_s13 = sshll.u32 %s1815_s12, 4  ;;  %s27_s13 = int_to_ptr.vmem [resolvable:$true] %s26_s13 }
   0x4   :  { %s1737_s14 = scalar_lea.vmem %s27_s13, 1024  ;;  %p1742_p1 = scmp.lt.s32.totalorder %s27_s13, %s27_s13 }
   0x5   :  { %p1738_p0 = scmp.ne.s32.totalorder %s27_s13, %s1737_s14  ;;  %p1743_p2 = scmp.lt.s32.totalorder %s1737_s14, %s1737_s14 }
   0x7   :  { %p1744_p3 = por %p1743_p2, %p1742_p1 }
   0x9   :  { %p1745_p4 = pnand %p1744_p3, %p1738_p0 }
   0xb   :  { %1748 = shalt.err (!%p1745_p4)
}
   0xc   :  { %s1816_s15 = smov 64   ;;  %s1817_s16 = smov 4  }
   0xd   :  { %32 = dma.hbm_to_vmem [thread:$0]  %s2272_s1, 1024, %s27_s13, [#allocation6], %s1816_s15, %s1816_s15, %s1817_s16  }
   0xe   :  { %s1818_s19 = smov [#allocation2]   ;;  %s1819_s21 = smov [#allocation7]  }
   0xf   :  { %s17_s20 = sshll.u32 %s1818_s19, 4  ;;  %s38_s22 = sshll.u32 %s1819_s21, 4  ;;  %s18_s20 = int_to_ptr.vmem [resolvable:$true] %s17_s20  ;;  %s39_s22 = int_to_ptr.vmem [resolvable:$true] %s38_s22 }
  0x10   :  { %s1757_s23 = scalar_lea.vmem %s18_s20, 64  ;;  %p1762_p6 = scmp.lt.s32.totalorder %s18_s20, %s18_s20 }
  0x11   :  { %p1758_p5 = scmp.ne.s32.totalorder %s18_s20, %s1757_s23  ;;  %p1763_p7 = scmp.lt.s32.totalorder %s1757_s23, %s1757_s23 }
  0x13   :  { %p1764_p8 = por %p1763_p7, %p1762_p6 }
  0x15   :  { %p1765_p9 = pnand %p1764_p8, %p1758_p5 }
  0x17   :  { %1768 = shalt.err (!%p1765_p9)
}
  0x18   :  { %20 = dma.hbm_to_vmem [thread:$0]  %s2271_s0, 64, %s18_s20, [#allocation3]  }
  0x19   :  { %s1777_s26 = scalar_lea.vmem %s39_s22, 1024  ;;  %p1782_p11 = scmp.lt.s32.totalorder %s39_s22, %s39_s22 }
  0x1a   :  { %p1778_p10 = scmp.ne.s32.totalorder %s39_s22, %s1777_s26  ;;  %p1783_p12 = scmp.lt.s32.totalorder %s1777_s26, %s1777_s26 }
  0x1c   :  { %p1784_p13 = por %p1783_p12, %p1782_p11 }
  0x1e   :  { %p1785_p0 = pnand %p1784_p13, %p1778_p10 }
  0x20   :  { %1788 = shalt.err (!%p1785_p0)
}
  0x21   :  { %44 = dma.hbm_to_vmem [thread:$0]  %s2273_s2, 1024, %s39_s22, [#allocation6], %s1816_s15, %s1816_s15, %s1817_s16  }
  0x22   :  { %1809 = dma.done.wait [#allocation3], 64  }
  0x23   :  { %1810 = vsyncadd [#allocation3], 4294967232 }
  0x24   :  { %1811 = dma.done.wait [#allocation6], 2048  }
  0x25   :  { %1812 = vsyncadd [#allocation6], 4294965248  ;;  %v1820_v0 = vmov 0.0   ;;  %vm1821_vm0 = vmmov 0   ;;  %v1858_v1 = vld [vmem:[#allocation5 + $0x38] sm:$0xff]   ;;  %v1861_v2 = vld [vmem:[#allocation5 + $0x30] sm:$0xff]  }
  0x26   :  { %1305 = vmatprep.subr.bf16.mxu0 %v1820_v0  ;;  %1321 = vmatprep.mubr.msk.bf16.mxu0 %vm1821_vm0, %v1820_v0  ;;  %v1865_v3 = vld [vmem:[#allocation5 + $0x28] sm:$0xff]   ;;  %v1868_v4 = vld [vmem:[#allocation7 + $0x38] sm:$0xff]   ;;  %v1871_v5 = vld [vmem:[#allocation5 + $0x20] sm:$0xff]   ;;  %s1822_s0 = smov [#allocation8]  }
  0x27   :  { %1325 = vmatprep.subr.bf16.mxu1 %v1820_v0  ;;  %1341 = vmatprep.mubr.msk.bf16.mxu1 %vm1821_vm0, %v1820_v0  ;;  %v1875_v6 = vld [vmem:[#allocation7 + $0x30] sm:$0xff]   ;;  %v1879_v7 = vld [vmem:[#allocation5 + $0x18] sm:$0xff]   ;;  %v1883_v8 = vld [vmem:[#allocation7 + $0x28] sm:$0xff]   ;;  %s1089_s2 = sshll.u32 %s1822_s0, 4  ;;  %s1090_s2 = int_to_ptr.vmem [resolvable:$true] %s1089_s2 }
  0x28   :  { %1306 = vmatpush3.bf16.msra.mxu0 %v1858_v1  ;;  %1326 = vmatpush3.bf16.msra.mxu1 %v1868_v4  ;;  %v1887_v9 = vld [vmem:[#allocation5 + $0x10] sm:$0xff]   ;;  %v1891_v10 = vld [vmem:[#allocation7 + $0x20] sm:$0xff]   ;;  %v1895_v11 = vld [vmem:[#allocation5 + $0x8] sm:$0xff]   ;;  %s1789_s28 = scalar_lea.vmem %s1090_s2, 128  ;;  %p1794_p2 = scmp.lt.s32.totalorder %s1090_s2, %s1090_s2 }
  0x29   :  { %1307 = vmatprep.subr.bf16.mxu0 %v1820_v0  ;;  %1327 = vmatprep.subr.bf16.mxu1 %v1820_v0  ;;  %v1899_v12 = vld [vmem:[#allocation7 + $0x18] sm:$0xff]   ;;  %v1903_v13 = vld [vmem:[#allocation5] sm:$0xff]   ;;  %v1907_v14 = vld [vmem:[#allocation7 + $0x10] sm:$0xff]   ;;  %p1790_p1 = scmp.ne.s32.totalorder %s1090_s2, %s1789_s28  ;;  %p1795_p3 = scmp.lt.s32.totalorder %s1789_s28, %s1789_s28 }
  0x2a   :  { %v87_v15 = vld [vmem:[#allocation2] sm:$0xf]  ;;  %v1912_v16 = vld [vmem:[#allocation7 + $0x8] sm:$0xff]   ;;  %v1936_v17 = vld [vmem:[#allocation7] sm:$0xff]  }
  0x2b   :  { %p1796_p4 = por %p1795_p3, %p1794_p2 }
  0x2c   :  { %1308 = vmatpush3.bf16.msra.mxu0 %v1861_v2  ;;  %1328 = vmatpush3.bf16.msra.mxu1 %v1875_v6 }
  0x2d   :  { %1309 = vmatprep.subr.bf16.mxu0 %v1820_v0  ;;  %1329 = vmatprep.subr.bf16.mxu1 %v1820_v0  ;;  %p1797_p5 = pnand %p1796_p4, %p1790_p1 }
  0x30   :  { %1310 = vmatpush3.bf16.msra.mxu0 %v1865_v3  ;;  %1330 = vmatpush3.bf16.msra.mxu1 %v1883_v8 }
  0x31   :  { %1311 = vmatprep.subr.bf16.mxu0 %v1820_v0  ;;  %1331 = vmatprep.subr.bf16.mxu1 %v1820_v0 }
  0x34   :  { %1312 = vmatpush3.bf16.msra.mxu0 %v1871_v5  ;;  %1332 = vmatpush3.bf16.msra.mxu1 %v1891_v10 }
  0x35   :  { %1313 = vmatprep.subr.bf16.mxu0 %v1820_v0  ;;  %1333 = vmatprep.subr.bf16.mxu1 %v1820_v0 }
  0x38   :  { %1314 = vmatpush3.bf16.msra.mxu0 %v1879_v7  ;;  %1334 = vmatpush3.bf16.msra.mxu1 %v1899_v12 }
  0x39   :  { %1315 = vmatprep.subr.bf16.mxu0 %v1820_v0  ;;  %1335 = vmatprep.subr.bf16.mxu1 %v1820_v0 }
  0x3c   :  { %1316 = vmatpush3.bf16.msra.mxu0 %v1887_v9  ;;  %1336 = vmatpush3.bf16.msra.mxu1 %v1907_v14 }
  0x3d   :  { %1317 = vmatprep.subr.bf16.mxu0 %v1820_v0  ;;  %1337 = vmatprep.subr.bf16.mxu1 %v1820_v0 }
  0x40   :  { %1318 = vmatpush3.bf16.msra.mxu0 %v1895_v11  ;;  %1338 = vmatpush3.bf16.msra.mxu1 %v1912_v16 }
  0x41   :  { %1319 = vmatprep.subr.bf16.mxu0 %v1820_v0  ;;  %1339 = vmatprep.subr.bf16.mxu1 %v1820_v0 }
  0x44   :  { %1320 = vmatpush3.bf16.msra.mxu0 %v1903_v13  ;;  %1340 = vmatpush3.bf16.msra.mxu1 %v1936_v17 }
  0x45   :  { %1345 = vmatprep.subr.bf16.mxu0 %v1820_v0  ;;  %1365 = vmatprep.subr.bf16.mxu1 %v1820_v0 }
  0x47   :  { %1322 = vmatmul.mubr.bf16.vlgmr.msra.gmra.mxu0 %v87_v15 }
  0x48   :  { %1346 = vmatpush3.bf16.msra.mxu0 %v1858_v1  ;;  %1361 = vmatprep.mubr.msk.bf16.mxu0 %vm1821_vm0, %v1820_v0 }
  0x49   :  { %1347 = vmatprep.subr.bf16.mxu0 %v1820_v0 }
  0x4c   :  { %1348 = vmatpush3.bf16.msra.mxu0 %v1861_v2 }
  0x4d   :  { %1349 = vmatprep.subr.bf16.mxu0 %v1820_v0 }
  0x50   :  { %1350 = vmatpush3.bf16.msra.mxu0 %v1865_v3 }
  0x51   :  { %1351 = vmatprep.subr.bf16.mxu0 %v1820_v0 }
  0x54   :  { %1352 = vmatpush3.bf16.msra.mxu0 %v1871_v5 }
  0x55   :  { %1353 = vmatprep.subr.bf16.mxu0 %v1820_v0 }
  0x58   :  { %1354 = vmatpush3.bf16.msra.mxu0 %v1879_v7 }
  0x59   :  { %1355 = vmatprep.subr.bf16.mxu0 %v1820_v0 }
  0x5c   :  { %1356 = vmatpush3.bf16.msra.mxu0 %v1887_v9 }
  0x5d   :  { %1357 = vmatprep.subr.bf16.mxu0 %v1820_v0 }
  0x60   :  { %1358 = vmatpush3.bf16.msra.mxu0 %v1895_v11 }
  0x61   :  { %1359 = vmatprep.subr.bf16.mxu0 %v1820_v0 }
  0x64   :  { %1360 = vmatpush3.bf16.msra.mxu0 %v1903_v13 }
  0x65   :  { %1385 = vmatprep.subr.bf16.mxu0 %v1820_v0 }
 0x107   :  { %v170_v18 = vpop.f32.mrf.mxu0 }
 0x108   :  { %v176_v19 = vmax.f32 %v170_v18, 0.0 }
 0x109   :  { %v1323_v20 = vpop.f32.mrf.mxu0 }
 0x10a   :  { %v177_v21 = vpack.c.bf16 %v176_v19, %v176_v19 }
 0x10b   :  { %v173_v22 = vpop.f32.mrf.mxu0 }
 0x10c   :  { %1342 = vmatmul.mubr.bf16.vlgmr.msra.gmra.mxu1 %v177_v21 }
 0x10d   :  { %v1324_v23 = vpop.f32.mrf.mxu0  ;;  %1366 = vmatpush3.bf16.msra.mxu1 %v1868_v4  ;;  %1381 = vmatprep.mubr.msk.bf16.mxu1 %vm1821_vm0, %v1820_v0 }
 0x10e   :  { %1367 = vmatprep.subr.bf16.mxu1 %v1820_v0 }
 0x111   :  { %1368 = vmatpush3.bf16.msra.mxu1 %v1875_v6 }
 0x112   :  { %1369 = vmatprep.subr.bf16.mxu1 %v1820_v0 }
 0x115   :  { %1370 = vmatpush3.bf16.msra.mxu1 %v1883_v8 }
 0x116   :  { %1371 = vmatprep.subr.bf16.mxu1 %v1820_v0 }
 0x119   :  { %1372 = vmatpush3.bf16.msra.mxu1 %v1891_v10 }
 0x11a   :  { %1373 = vmatprep.subr.bf16.mxu1 %v1820_v0 }
 0x11d   :  { %1374 = vmatpush3.bf16.msra.mxu1 %v1899_v12 }
 0x11e   :  { %1375 = vmatprep.subr.bf16.mxu1 %v1820_v0 }
 0x121   :  { %1376 = vmatpush3.bf16.msra.mxu1 %v1907_v14 }
 0x122   :  { %1377 = vmatprep.subr.bf16.mxu1 %v1820_v0 }
 0x125   :  { %1378 = vmatpush3.bf16.msra.mxu1 %v1912_v16 }
 0x126   :  { %1379 = vmatprep.subr.bf16.mxu1 %v1820_v0 }
 0x129   :  { %1380 = vmatpush3.bf16.msra.mxu1 %v1936_v17 }
 0x12a   :  { %1405 = vmatprep.subr.bf16.mxu1 %v1820_v0 }
 0x1cc   :  { %v260_v24 = vpop.f32.mrf.mxu1 }
 0x1cd   :  { %v272_v25 = vpack.c.bf16 %v260_v24, %v260_v24  ;;  %vm267_vm1 = vcmp.ge.f32.partialorder %v260_v24, 0.5 }
 0x1ce   :  { %v1343_v26 = vpop.f32.mrf.mxu1  ;;  %v271_v35 = vsel %vm267_vm1, 0.0, %v260_v24  ;;  %v1115_v41 = vsel %vm267_vm1, 1.0, %v1820_v0 }
 0x1cf   :  { %1362 = vmatmul.mubr.bf16.vlgmr.msra.gmra.mxu0 %v272_v25  ;;  %v355_v36 = vmul.f32 0.2, %v271_v35 }
 0x1d0   :  { %v263_v27 = vpop.f32.mrf.mxu1  ;;  %1386 = vmatpush3.bf16.msra.mxu0 %v1858_v1  ;;  %1401 = vmatprep.mubr.msk.bf16.mxu0 %vm1821_vm0, %v1820_v0 }
 0x1d1   :  { %1387 = vmatprep.subr.bf16.mxu0 %v1820_v0 }
 0x1d2   :  { %v1344_v28 = vpop.f32.mrf.mxu1 }
 0x1d4   :  { %1388 = vmatpush3.bf16.msra.mxu0 %v1861_v2 }
 0x1d5   :  { %1389 = vmatprep.subr.bf16.mxu0 %v1820_v0 }
 0x1d8   :  { %1390 = vmatpush3.bf16.msra.mxu0 %v1865_v3 }
 0x1d9   :  { %1391 = vmatprep.subr.bf16.mxu0 %v1820_v0 }
 0x1dc   :  { %1392 = vmatpush3.bf16.msra.mxu0 %v1871_v5 }
 0x1dd   :  { %1393 = vmatprep.subr.bf16.mxu0 %v1820_v0 }
 0x1e0   :  { %1394 = vmatpush3.bf16.msra.mxu0 %v1879_v7 }
 0x1e1   :  { %1395 = vmatprep.subr.bf16.mxu0 %v1820_v0 }
 0x1e4   :  { %1396 = vmatpush3.bf16.msra.mxu0 %v1887_v9 }
 0x1e5   :  { %1397 = vmatprep.subr.bf16.mxu0 %v1820_v0 }
 0x1e8   :  { %1398 = vmatpush3.bf16.msra.mxu0 %v1895_v11 }
 0x1e9   :  { %1399 = vmatprep.subr.bf16.mxu0 %v1820_v0 }
 0x1ec   :  { %1400 = vmatpush3.bf16.msra.mxu0 %v1903_v13 }
 0x1ed   :  { %1425 = vmatprep.subr.bf16.mxu0 %v1820_v0 }
 0x28f   :  { %v307_v29 = vpop.f32.mrf.mxu0 }
 0x290   :  { %v313_v30 = vmax.f32 %v307_v29, 0.0 }
 0x291   :  { %v1363_v31 = vpop.f32.mrf.mxu0 }
 0x292   :  { %v314_v32 = vpack.c.bf16 %v313_v30, %v313_v30 }
 0x293   :  { %v310_v33 = vpop.f32.mrf.mxu0 }
 0x294   :  { %1382 = vmatmul.mubr.bf16.vlgmr.msra.gmra.mxu1 %v314_v32 }
 0x295   :  { %v1364_v34 = vpop.f32.mrf.mxu0  ;;  %1406 = vmatpush3.bf16.msra.mxu1 %v1868_v4  ;;  %1421 = vmatprep.mubr.msk.bf16.mxu1 %vm1821_vm0, %v1820_v0 }
 0x296   :  { %1407 = vmatprep.subr.bf16.mxu1 %v1820_v0 }
 0x299   :  { %1408 = vmatpush3.bf16.msra.mxu1 %v1875_v6 }
 0x29a   :  { %1409 = vmatprep.subr.bf16.mxu1 %v1820_v0 }
 0x29d   :  { %1410 = vmatpush3.bf16.msra.mxu1 %v1883_v8 }
 0x29e   :  { %1411 = vmatprep.subr.bf16.mxu1 %v1820_v0 }
 0x2a1   :  { %1412 = vmatpush3.bf16.msra.mxu1 %v1891_v10 }
 0x2a2   :  { %1413 = vmatprep.subr.bf16.mxu1 %v1820_v0 }
 0x2a5   :  { %1414 = vmatpush3.bf16.msra.mxu1 %v1899_v12 }
 0x2a6   :  { %1415 = vmatprep.subr.bf16.mxu1 %v1820_v0 }
 0x2a9   :  { %1416 = vmatpush3.bf16.msra.mxu1 %v1907_v14 }
 0x2aa   :  { %1417 = vmatprep.subr.bf16.mxu1 %v1820_v0 }
 0x2ad   :  { %1418 = vmatpush3.bf16.msra.mxu1 %v1912_v16 }
 0x2ae   :  { %1419 = vmatprep.subr.bf16.mxu1 %v1820_v0 }
 0x2b1   :  { %1420 = vmatpush3.bf16.msra.mxu1 %v1936_v17 }
 0x2b2   :  { %1445 = vmatprep.subr.bf16.mxu1 %v1820_v0 }
 0x354   :  { %v349_v37 = vpop.f32.mrf.mxu1 }
 0x355   :  { %v356_v38 = vadd.f32 %v355_v36, %v349_v37  ;;  %v362_v39 = vpack.c.bf16 %v349_v37, %v349_v37 }
 0x356   :  { %v1383_v40 = vpop.f32.mrf.mxu1 }
 0x357   :  { %vm357_vm2 = vcmp.ge.f32.partialorder %v356_v38, 0.5  ;;  %1402 = vmatmul.mubr.bf16.vlgmr.msra.gmra.mxu0 %v362_v39 }
 0x358   :  { %v1116_v42 = vsel %vm357_vm2, 1.0, %v1820_v0  ;;  %v352_v43 = vpop.f32.mrf.mxu1  ;;  %1426 = vmatpush3.bf16.msra.mxu0 %v1858_v1  ;;  %1441 = vmatprep.mubr.msk.bf16.mxu0 %vm1821_vm0, %v1820_v0  ;;  %v361_v52 = vsel %vm357_vm2, 0.0, %v356_v38 }
 0x359   :  { %v360_v44 = vadd.f32 %v1116_v42, %v1115_v41  ;;  %1427 = vmatprep.subr.bf16.mxu0 %v1820_v0  ;;  %v445_v53 = vmul.f32 0.2, %v361_v52 }
 0x35a   :  { %v1384_v45 = vpop.f32.mrf.mxu1 }
 0x35c   :  { %1428 = vmatpush3.bf16.msra.mxu0 %v1861_v2 }
 0x35d   :  { %1429 = vmatprep.subr.bf16.mxu0 %v1820_v0 }
 0x360   :  { %1430 = vmatpush3.bf16.msra.mxu0 %v1865_v3 }
 0x361   :  { %1431 = vmatprep.subr.bf16.mxu0 %v1820_v0 }
 0x364   :  { %1432 = vmatpush3.bf16.msra.mxu0 %v1871_v5 }
 0x365   :  { %1433 = vmatprep.subr.bf16.mxu0 %v1820_v0 }
 0x368   :  { %1434 = vmatpush3.bf16.msra.mxu0 %v1879_v7 }
 0x369   :  { %1435 = vmatprep.subr.bf16.mxu0 %v1820_v0 }
 0x36c   :  { %1436 = vmatpush3.bf16.msra.mxu0 %v1887_v9 }
 0x36d   :  { %1437 = vmatprep.subr.bf16.mxu0 %v1820_v0 }
 0x370   :  { %1438 = vmatpush3.bf16.msra.mxu0 %v1895_v11 }
 0x371   :  { %1439 = vmatprep.subr.bf16.mxu0 %v1820_v0 }
 0x374   :  { %1440 = vmatpush3.bf16.msra.mxu0 %v1903_v13 }
 0x375   :  { %1465 = vmatprep.subr.bf16.mxu0 %v1820_v0 }
 0x417   :  { %v397_v46 = vpop.f32.mrf.mxu0 }
 0x418   :  { %v403_v47 = vmax.f32 %v397_v46, 0.0 }
 0x419   :  { %v1403_v48 = vpop.f32.mrf.mxu0 }
 0x41a   :  { %v404_v49 = vpack.c.bf16 %v403_v47, %v403_v47 }
 0x41b   :  { %v400_v50 = vpop.f32.mrf.mxu0 }
 0x41c   :  { %1422 = vmatmul.mubr.bf16.vlgmr.msra.gmra.mxu1 %v404_v49 }
 0x41d   :  { %v1404_v51 = vpop.f32.mrf.mxu0  ;;  %1446 = vmatpush3.bf16.msra.mxu1 %v1868_v4  ;;  %1461 = vmatprep.mubr.msk.bf16.mxu1 %vm1821_vm0, %v1820_v0 }
 0x41e   :  { %1447 = vmatprep.subr.bf16.mxu1 %v1820_v0 }
 0x421   :  { %1448 = vmatpush3.bf16.msra.mxu1 %v1875_v6 }
 0x422   :  { %1449 = vmatprep.subr.bf16.mxu1 %v1820_v0 }
 0x425   :  { %1450 = vmatpush3.bf16.msra.mxu1 %v1883_v8 }
 0x426   :  { %1451 = vmatprep.subr.bf16.mxu1 %v1820_v0 }
 0x429   :  { %1452 = vmatpush3.bf16.msra.mxu1 %v1891_v10 }
 0x42a   :  { %1453 = vmatprep.subr.bf16.mxu1 %v1820_v0 }
 0x42d   :  { %1454 = vmatpush3.bf16.msra.mxu1 %v1899_v12 }
 0x42e   :  { %1455 = vmatprep.subr.bf16.mxu1 %v1820_v0 }
 0x431   :  { %1456 = vmatpush3.bf16.msra.mxu1 %v1907_v14 }
 0x432   :  { %1457 = vmatprep.subr.bf16.mxu1 %v1820_v0 }
 0x435   :  { %1458 = vmatpush3.bf16.msra.mxu1 %v1912_v16 }
 0x436   :  { %1459 = vmatprep.subr.bf16.mxu1 %v1820_v0 }
 0x439   :  { %1460 = vmatpush3.bf16.msra.mxu1 %v1936_v17 }
 0x43a   :  { %1485 = vmatprep.subr.bf16.mxu1 %v1820_v0 }
 0x4dc   :  { %v439_v54 = vpop.f32.mrf.mxu1 }
 0x4dd   :  { %v446_v55 = vadd.f32 %v445_v53, %v439_v54  ;;  %v452_v56 = vpack.c.bf16 %v439_v54, %v439_v54 }
 0x4de   :  { %v1423_v57 = vpop.f32.mrf.mxu1 }
 0x4df   :  { %vm447_vm3 = vcmp.ge.f32.partialorder %v446_v55, 0.5  ;;  %1442 = vmatmul.mubr.bf16.vlgmr.msra.gmra.mxu0 %v452_v56 }
 0x4e0   :  { %v1117_v58 = vsel %vm447_vm3, 1.0, %v1820_v0  ;;  %v442_v59 = vpop.f32.mrf.mxu1  ;;  %1466 = vmatpush3.bf16.msra.mxu0 %v1858_v1  ;;  %1481 = vmatprep.mubr.msk.bf16.mxu0 %vm1821_vm0, %v1820_v0  ;;  %v451_v21 = vsel %vm447_vm3, 0.0, %v446_v55 }
 0x4e1   :  { %v450_v60 = vadd.f32 %v1117_v58, %v360_v44  ;;  %1467 = vmatprep.subr.bf16.mxu0 %v1820_v0  ;;  %v535_v22 = vmul.f32 0.2, %v451_v21 }
 0x4e2   :  { %v1424_v61 = vpop.f32.mrf.mxu1 }
 0x4e4   :  { %1468 = vmatpush3.bf16.msra.mxu0 %v1861_v2 }
 0x4e5   :  { %1469 = vmatprep.subr.bf16.mxu0 %v1820_v0 }
 0x4e8   :  { %1470 = vmatpush3.bf16.msra.mxu0 %v1865_v3 }
 0x4e9   :  { %1471 = vmatprep.subr.bf16.mxu0 %v1820_v0 }
 0x4ec   :  { %1472 = vmatpush3.bf16.msra.mxu0 %v1871_v5 }
 0x4ed   :  { %1473 = vmatprep.subr.bf16.mxu0 %v1820_v0 }
 0x4f0   :  { %1474 = vmatpush3.bf16.msra.mxu0 %v1879_v7 }
 0x4f1   :  { %1475 = vmatprep.subr.bf16.mxu0 %v1820_v0 }
 0x4f4   :  { %1476 = vmatpush3.bf16.msra.mxu0 %v1887_v9 }
 0x4f5   :  { %1477 = vmatprep.subr.bf16.mxu0 %v1820_v0 }
 0x4f8   :  { %1478 = vmatpush3.bf16.msra.mxu0 %v1895_v11 }
 0x4f9   :  { %1479 = vmatprep.subr.bf16.mxu0 %v1820_v0 }
 0x4fc   :  { %1480 = vmatpush3.bf16.msra.mxu0 %v1903_v13 }
 0x4fd   :  { %1505 = vmatprep.subr.bf16.mxu0 %v1820_v0 }
 0x59f   :  { %v487_v62 = vpop.f32.mrf.mxu0 }
 0x5a0   :  { %v493_v63 = vmax.f32 %v487_v62, 0.0 }
 0x5a1   :  { %v1443_v15 = vpop.f32.mrf.mxu0 }
 0x5a2   :  { %v494_v18 = vpack.c.bf16 %v493_v63, %v493_v63 }
 0x5a3   :  { %v490_v19 = vpop.f32.mrf.mxu0 }
 0x5a4   :  { %1462 = vmatmul.mubr.bf16.vlgmr.msra.gmra.mxu1 %v494_v18 }
 0x5a5   :  { %v1444_v20 = vpop.f32.mrf.mxu0  ;;  %1486 = vmatpush3.bf16.msra.mxu1 %v1868_v4  ;;  %1501 = vmatprep.mubr.msk.bf16.mxu1 %vm1821_vm0, %v1820_v0 }
 0x5a6   :  { %1487 = vmatprep.subr.bf16.mxu1 %v1820_v0 }
 0x5a9   :  { %1488 = vmatpush3.bf16.msra.mxu1 %v1875_v6 }
 0x5aa   :  { %1489 = vmatprep.subr.bf16.mxu1 %v1820_v0 }
 0x5ad   :  { %1490 = vmatpush3.bf16.msra.mxu1 %v1883_v8 }
 0x5ae   :  { %1491 = vmatprep.subr.bf16.mxu1 %v1820_v0 }
 0x5b1   :  { %1492 = vmatpush3.bf16.msra.mxu1 %v1891_v10 }
 0x5b2   :  { %1493 = vmatprep.subr.bf16.mxu1 %v1820_v0 }
 0x5b5   :  { %1494 = vmatpush3.bf16.msra.mxu1 %v1899_v12 }
 0x5b6   :  { %1495 = vmatprep.subr.bf16.mxu1 %v1820_v0 }
 0x5b9   :  { %1496 = vmatpush3.bf16.msra.mxu1 %v1907_v14 }
 0x5ba   :  { %1497 = vmatprep.subr.bf16.mxu1 %v1820_v0 }
 0x5bd   :  { %1498 = vmatpush3.bf16.msra.mxu1 %v1912_v16 }
 0x5be   :  { %1499 = vmatprep.subr.bf16.mxu1 %v1820_v0 }
 0x5c1   :  { %1500 = vmatpush3.bf16.msra.mxu1 %v1936_v17 }
 0x5c2   :  { %1525 = vmatprep.subr.bf16.mxu1 %v1820_v0 }
 0x664   :  { %v529_v23 = vpop.f32.mrf.mxu1 }
 0x665   :  { %v536_v24 = vadd.f32 %v535_v22, %v529_v23  ;;  %v542_v25 = vpack.c.bf16 %v529_v23, %v529_v23 }
 0x666   :  { %v1463_v26 = vpop.f32.mrf.mxu1 }
 0x667   :  { %vm537_vm4 = vcmp.ge.f32.partialorder %v536_v24, 0.5  ;;  %1482 = vmatmul.mubr.bf16.vlgmr.msra.gmra.mxu0 %v542_v25 }
 0x668   :  { %v1118_v27 = vsel %vm537_vm4, 1.0, %v1820_v0  ;;  %v532_v28 = vpop.f32.mrf.mxu1  ;;  %1506 = vmatpush3.bf16.msra.mxu0 %v1858_v1  ;;  %1521 = vmatprep.mubr.msk.bf16.mxu0 %vm1821_vm0, %v1820_v0  ;;  %v541_v37 = vsel %vm537_vm4, 0.0, %v536_v24 }
 0x669   :  { %v540_v29 = vadd.f32 %v1118_v27, %v450_v60  ;;  %1507 = vmatprep.subr.bf16.mxu0 %v1820_v0  ;;  %v625_v38 = vmul.f32 0.2, %v541_v37 }
 0x66a   :  { %v1464_v30 = vpop.f32.mrf.mxu1 }
 0x66c   :  { %1508 = vmatpush3.bf16.msra.mxu0 %v1861_v2 }
 0x66d   :  { %1509 = vmatprep.subr.bf16.mxu0 %v1820_v0 }
 0x670   :  { %1510 = vmatpush3.bf16.msra.mxu0 %v1865_v3 }
 0x671   :  { %1511 = vmatprep.subr.bf16.mxu0 %v1820_v0 }
 0x674   :  { %1512 = vmatpush3.bf16.msra.mxu0 %v1871_v5 }
 0x675   :  { %1513 = vmatprep.subr.bf16.mxu0 %v1820_v0 }
 0x678   :  { %1514 = vmatpush3.bf16.msra.mxu0 %v1879_v7 }
 0x679   :  { %1515 = vmatprep.subr.bf16.mxu0 %v1820_v0 }
 0x67c   :  { %1516 = vmatpush3.bf16.msra.mxu0 %v1887_v9 }
 0x67d   :  { %1517 = vmatprep.subr.bf16.mxu0 %v1820_v0 }
 0x680   :  { %1518 = vmatpush3.bf16.msra.mxu0 %v1895_v11 }
 0x681   :  { %1519 = vmatprep.subr.bf16.mxu0 %v1820_v0 }
 0x684   :  { %1520 = vmatpush3.bf16.msra.mxu0 %v1903_v13 }
 0x685   :  { %1545 = vmatprep.subr.bf16.mxu0 %v1820_v0 }
 0x727   :  { %v577_v31 = vpop.f32.mrf.mxu0 }
 0x728   :  { %v583_v32 = vmax.f32 %v577_v31, 0.0 }
 0x729   :  { %v1483_v33 = vpop.f32.mrf.mxu0 }
 0x72a   :  { %v584_v34 = vpack.c.bf16 %v583_v32, %v583_v32 }
 0x72b   :  { %v580_v35 = vpop.f32.mrf.mxu0 }
 0x72c   :  { %1502 = vmatmul.mubr.bf16.vlgmr.msra.gmra.mxu1 %v584_v34 }
 0x72d   :  { %v1484_v36 = vpop.f32.mrf.mxu0  ;;  %1526 = vmatpush3.bf16.msra.mxu1 %v1868_v4  ;;  %1541 = vmatprep.mubr.msk.bf16.mxu1 %vm1821_vm0, %v1820_v0 }
 0x72e   :  { %1527 = vmatprep.subr.bf16.mxu1 %v1820_v0 }
 0x731   :  { %1528 = vmatpush3.bf16.msra.mxu1 %v1875_v6 }
 0x732   :  { %1529 = vmatprep.subr.bf16.mxu1 %v1820_v0 }
 0x735   :  { %1530 = vmatpush3.bf16.msra.mxu1 %v1883_v8 }
 0x736   :  { %1531 = vmatprep.subr.bf16.mxu1 %v1820_v0 }
 0x739   :  { %1532 = vmatpush3.bf16.msra.mxu1 %v1891_v10 }
 0x73a   :  { %1533 = vmatprep.subr.bf16.mxu1 %v1820_v0 }
 0x73d   :  { %1534 = vmatpush3.bf16.msra.mxu1 %v1899_v12 }
 0x73e   :  { %1535 = vmatprep.subr.bf16.mxu1 %v1820_v0 }
 0x741   :  { %1536 = vmatpush3.bf16.msra.mxu1 %v1907_v14 }
 0x742   :  { %1537 = vmatprep.subr.bf16.mxu1 %v1820_v0 }
 0x745   :  { %1538 = vmatpush3.bf16.msra.mxu1 %v1912_v16 }
 0x746   :  { %1539 = vmatprep.subr.bf16.mxu1 %v1820_v0 }
 0x749   :  { %1540 = vmatpush3.bf16.msra.mxu1 %v1936_v17 }
 0x74a   :  { %1565 = vmatprep.subr.bf16.mxu1 %v1820_v0 }
 0x7ec   :  { %v619_v39 = vpop.f32.mrf.mxu1 }
 0x7ed   :  { %v626_v40 = vadd.f32 %v625_v38, %v619_v39  ;;  %v632_v41 = vpack.c.bf16 %v619_v39, %v619_v39 }
 0x7ee   :  { %v1503_v42 = vpop.f32.mrf.mxu1 }
 0x7ef   :  { %vm627_vm5 = vcmp.ge.f32.partialorder %v626_v40, 0.5  ;;  %1522 = vmatmul.mubr.bf16.vlgmr.msra.gmra.mxu0 %v632_v41 }
 0x7f0   :  { %v1119_v43 = vsel %vm627_vm5, 1.0, %v1820_v0  ;;  %v622_v44 = vpop.f32.mrf.mxu1  ;;  %1546 = vmatpush3.bf16.msra.mxu0 %v1858_v1  ;;  %1561 = vmatprep.mubr.msk.bf16.mxu0 %vm1821_vm0, %v1820_v0  ;;  %v631_v53 = vsel %vm627_vm5, 0.0, %v626_v40 }
 0x7f1   :  { %v630_v45 = vadd.f32 %v1119_v43, %v540_v29  ;;  %1547 = vmatprep.subr.bf16.mxu0 %v1820_v0  ;;  %v715_v54 = vmul.f32 0.2, %v631_v53 }
 0x7f2   :  { %v1504_v46 = vpop.f32.mrf.mxu1 }
 0x7f4   :  { %1548 = vmatpush3.bf16.msra.mxu0 %v1861_v2 }
 0x7f5   :  { %1549 = vmatprep.subr.bf16.mxu0 %v1820_v0 }
 0x7f8   :  { %1550 = vmatpush3.bf16.msra.mxu0 %v1865_v3 }
 0x7f9   :  { %1551 = vmatprep.subr.bf16.mxu0 %v1820_v0 }
 0x7fc   :  { %1552 = vmatpush3.bf16.msra.mxu0 %v1871_v5 }
 0x7fd   :  { %1553 = vmatprep.subr.bf16.mxu0 %v1820_v0 }
 0x800   :  { %1554 = vmatpush3.bf16.msra.mxu0 %v1879_v7 }
 0x801   :  { %1555 = vmatprep.subr.bf16.mxu0 %v1820_v0 }
 0x804   :  { %1556 = vmatpush3.bf16.msra.mxu0 %v1887_v9 }
 0x805   :  { %1557 = vmatprep.subr.bf16.mxu0 %v1820_v0 }
 0x808   :  { %1558 = vmatpush3.bf16.msra.mxu0 %v1895_v11 }
 0x809   :  { %1559 = vmatprep.subr.bf16.mxu0 %v1820_v0 }
 0x80c   :  { %1560 = vmatpush3.bf16.msra.mxu0 %v1903_v13 }
 0x80d   :  { %1585 = vmatprep.subr.bf16.mxu0 %v1820_v0 }
 0x8af   :  { %v667_v47 = vpop.f32.mrf.mxu0 }
 0x8b0   :  { %v673_v48 = vmax.f32 %v667_v47, 0.0 }
 0x8b1   :  { %v1523_v49 = vpop.f32.mrf.mxu0 }
 0x8b2   :  { %v674_v50 = vpack.c.bf16 %v673_v48, %v673_v48 }
 0x8b3   :  { %v670_v51 = vpop.f32.mrf.mxu0 }
 0x8b4   :  { %1542 = vmatmul.mubr.bf16.vlgmr.msra.gmra.mxu1 %v674_v50 }
 0x8b5   :  { %v1524_v52 = vpop.f32.mrf.mxu0  ;;  %1566 = vmatpush3.bf16.msra.mxu1 %v1868_v4  ;;  %1581 = vmatprep.mubr.msk.bf16.mxu1 %vm1821_vm0, %v1820_v0 }
 0x8b6   :  { %1567 = vmatprep.subr.bf16.mxu1 %v1820_v0 }
 0x8b9   :  { %1568 = vmatpush3.bf16.msra.mxu1 %v1875_v6 }
 0x8ba   :  { %1569 = vmatprep.subr.bf16.mxu1 %v1820_v0 }
 0x8bd   :  { %1570 = vmatpush3.bf16.msra.mxu1 %v1883_v8 }
 0x8be   :  { %1571 = vmatprep.subr.bf16.mxu1 %v1820_v0 }
 0x8c1   :  { %1572 = vmatpush3.bf16.msra.mxu1 %v1891_v10 }
 0x8c2   :  { %1573 = vmatprep.subr.bf16.mxu1 %v1820_v0 }
 0x8c5   :  { %1574 = vmatpush3.bf16.msra.mxu1 %v1899_v12 }
 0x8c6   :  { %1575 = vmatprep.subr.bf16.mxu1 %v1820_v0 }
 0x8c9   :  { %1576 = vmatpush3.bf16.msra.mxu1 %v1907_v14 }
 0x8ca   :  { %1577 = vmatprep.subr.bf16.mxu1 %v1820_v0 }
 0x8cd   :  { %1578 = vmatpush3.bf16.msra.mxu1 %v1912_v16 }
 0x8ce   :  { %1579 = vmatprep.subr.bf16.mxu1 %v1820_v0 }
 0x8d1   :  { %1580 = vmatpush3.bf16.msra.mxu1 %v1936_v17 }
 0x8d2   :  { %1605 = vmatprep.subr.bf16.mxu1 %v1820_v0 }
 0x974   :  { %v709_v55 = vpop.f32.mrf.mxu1 }
 0x975   :  { %v716_v56 = vadd.f32 %v715_v54, %v709_v55  ;;  %v722_v57 = vpack.c.bf16 %v709_v55, %v709_v55 }
 0x976   :  { %v1543_v58 = vpop.f32.mrf.mxu1 }
 0x977   :  { %vm717_vm6 = vcmp.ge.f32.partialorder %v716_v56, 0.5  ;;  %1562 = vmatmul.mubr.bf16.vlgmr.msra.gmra.mxu0 %v722_v57 }
 0x978   :  { %v1120_v59 = vsel %vm717_vm6, 1.0, %v1820_v0  ;;  %v712_v60 = vpop.f32.mrf.mxu1  ;;  %1586 = vmatpush3.bf16.msra.mxu0 %v1858_v1  ;;  %1601 = vmatprep.mubr.msk.bf16.mxu0 %vm1821_vm0, %v1820_v0  ;;  %v721_v22 = vsel %vm717_vm6, 0.0, %v716_v56 }
 0x979   :  { %v720_v61 = vadd.f32 %v1120_v59, %v630_v45  ;;  %1587 = vmatprep.subr.bf16.mxu0 %v1820_v0  ;;  %v805_v23 = vmul.f32 0.2, %v721_v22 }
 0x97a   :  { %v1544_v62 = vpop.f32.mrf.mxu1 }
 0x97c   :  { %1588 = vmatpush3.bf16.msra.mxu0 %v1861_v2 }
 0x97d   :  { %1589 = vmatprep.subr.bf16.mxu0 %v1820_v0 }
 0x980   :  { %1590 = vmatpush3.bf16.msra.mxu0 %v1865_v3 }
 0x981   :  { %1591 = vmatprep.subr.bf16.mxu0 %v1820_v0 }
 0x984   :  { %1592 = vmatpush3.bf16.msra.mxu0 %v1871_v5 }
 0x985   :  { %1593 = vmatprep.subr.bf16.mxu0 %v1820_v0 }
 0x988   :  { %1594 = vmatpush3.bf16.msra.mxu0 %v1879_v7 }
 0x989   :  { %1595 = vmatprep.subr.bf16.mxu0 %v1820_v0 }
 0x98c   :  { %1596 = vmatpush3.bf16.msra.mxu0 %v1887_v9 }
 0x98d   :  { %1597 = vmatprep.subr.bf16.mxu0 %v1820_v0 }
 0x990   :  { %1598 = vmatpush3.bf16.msra.mxu0 %v1895_v11 }
 0x991   :  { %1599 = vmatprep.subr.bf16.mxu0 %v1820_v0 }
 0x994   :  { %1600 = vmatpush3.bf16.msra.mxu0 %v1903_v13 }
 0x995   :  { %1625 = vmatprep.subr.bf16.mxu0 %v1820_v0 }
 0xa37   :  { %v757_v63 = vpop.f32.mrf.mxu0 }
 0xa38   :  { %v763_v15 = vmax.f32 %v757_v63, 0.0 }
 0xa39   :  { %v1563_v18 = vpop.f32.mrf.mxu0 }
 0xa3a   :  { %v764_v19 = vpack.c.bf16 %v763_v15, %v763_v15 }
 0xa3b   :  { %v760_v20 = vpop.f32.mrf.mxu0 }
 0xa3c   :  { %1582 = vmatmul.mubr.bf16.vlgmr.msra.gmra.mxu1 %v764_v19 }
 0xa3d   :  { %v1564_v21 = vpop.f32.mrf.mxu0  ;;  %1606 = vmatpush3.bf16.msra.mxu1 %v1868_v4  ;;  %1621 = vmatprep.mubr.msk.bf16.mxu1 %vm1821_vm0, %v1820_v0 }
 0xa3e   :  { %1607 = vmatprep.subr.bf16.mxu1 %v1820_v0 }
 0xa41   :  { %1608 = vmatpush3.bf16.msra.mxu1 %v1875_v6 }
 0xa42   :  { %1609 = vmatprep.subr.bf16.mxu1 %v1820_v0 }
 0xa45   :  { %1610 = vmatpush3.bf16.msra.mxu1 %v1883_v8 }
 0xa46   :  { %1611 = vmatprep.subr.bf16.mxu1 %v1820_v0 }
 0xa49   :  { %1612 = vmatpush3.bf16.msra.mxu1 %v1891_v10 }
 0xa4a   :  { %1613 = vmatprep.subr.bf16.mxu1 %v1820_v0 }
 0xa4d   :  { %1614 = vmatpush3.bf16.msra.mxu1 %v1899_v12 }
 0xa4e   :  { %1615 = vmatprep.subr.bf16.mxu1 %v1820_v0 }
 0xa51   :  { %1616 = vmatpush3.bf16.msra.mxu1 %v1907_v14 }
 0xa52   :  { %1617 = vmatprep.subr.bf16.mxu1 %v1820_v0 }
 0xa55   :  { %1618 = vmatpush3.bf16.msra.mxu1 %v1912_v16 }
 0xa56   :  { %1619 = vmatprep.subr.bf16.mxu1 %v1820_v0 }
 0xa59   :  { %1620 = vmatpush3.bf16.msra.mxu1 %v1936_v17 }
 0xa5a   :  { %1645 = vmatprep.subr.bf16.mxu1 %v1820_v0 }
 0xafc   :  { %v799_v24 = vpop.f32.mrf.mxu1 }
 0xafd   :  { %v806_v25 = vadd.f32 %v805_v23, %v799_v24  ;;  %v812_v26 = vpack.c.bf16 %v799_v24, %v799_v24 }
 0xafe   :  { %v1583_v27 = vpop.f32.mrf.mxu1 }
 0xaff   :  { %vm807_vm7 = vcmp.ge.f32.partialorder %v806_v25, 0.5  ;;  %1602 = vmatmul.mubr.bf16.vlgmr.msra.gmra.mxu0 %v812_v26 }
 0xb00   :  { %v1121_v28 = vsel %vm807_vm7, 1.0, %v1820_v0  ;;  %v802_v29 = vpop.f32.mrf.mxu1  ;;  %1626 = vmatpush3.bf16.msra.mxu0 %v1858_v1  ;;  %1641 = vmatprep.mubr.msk.bf16.mxu0 %vm1821_vm0, %v1820_v0  ;;  %v811_v38 = vsel %vm807_vm7, 0.0, %v806_v25 }
 0xb01   :  { %v810_v30 = vadd.f32 %v1121_v28, %v720_v61  ;;  %1627 = vmatprep.subr.bf16.mxu0 %v1820_v0  ;;  %v895_v39 = vmul.f32 0.2, %v811_v38 }
 0xb02   :  { %v1584_v31 = vpop.f32.mrf.mxu1 }
 0xb04   :  { %1628 = vmatpush3.bf16.msra.mxu0 %v1861_v2 }
 0xb05   :  { %1629 = vmatprep.subr.bf16.mxu0 %v1820_v0 }
 0xb08   :  { %1630 = vmatpush3.bf16.msra.mxu0 %v1865_v3 }
 0xb09   :  { %1631 = vmatprep.subr.bf16.mxu0 %v1820_v0 }
 0xb0c   :  { %1632 = vmatpush3.bf16.msra.mxu0 %v1871_v5 }
 0xb0d   :  { %1633 = vmatprep.subr.bf16.mxu0 %v1820_v0 }
 0xb10   :  { %1634 = vmatpush3.bf16.msra.mxu0 %v1879_v7 }
 0xb11   :  { %1635 = vmatprep.subr.bf16.mxu0 %v1820_v0 }
 0xb14   :  { %1636 = vmatpush3.bf16.msra.mxu0 %v1887_v9 }
 0xb15   :  { %1637 = vmatprep.subr.bf16.mxu0 %v1820_v0 }
 0xb18   :  { %1638 = vmatpush3.bf16.msra.mxu0 %v1895_v11 }
 0xb19   :  { %1639 = vmatprep.subr.bf16.mxu0 %v1820_v0 }
 0xb1c   :  { %1640 = vmatpush3.bf16.msra.mxu0 %v1903_v13 }
 0xb1d   :  { %1665 = vmatprep.subr.bf16.mxu0 %v1820_v0 }
 0xbbf   :  { %v847_v32 = vpop.f32.mrf.mxu0 }
 0xbc0   :  { %v853_v33 = vmax.f32 %v847_v32, 0.0 }
 0xbc1   :  { %v1603_v34 = vpop.f32.mrf.mxu0 }
 0xbc2   :  { %v854_v35 = vpack.c.bf16 %v853_v33, %v853_v33 }
 0xbc3   :  { %v850_v36 = vpop.f32.mrf.mxu0 }
 0xbc4   :  { %1622 = vmatmul.mubr.bf16.vlgmr.msra.gmra.mxu1 %v854_v35 }
 0xbc5   :  { %v1604_v37 = vpop.f32.mrf.mxu0  ;;  %1646 = vmatpush3.bf16.msra.mxu1 %v1868_v4  ;;  %1661 = vmatprep.mubr.msk.bf16.mxu1 %vm1821_vm0, %v1820_v0 }
 0xbc6   :  { %1647 = vmatprep.subr.bf16.mxu1 %v1820_v0 }
 0xbc9   :  { %1648 = vmatpush3.bf16.msra.mxu1 %v1875_v6 }
 0xbca   :  { %1649 = vmatprep.subr.bf16.mxu1 %v1820_v0 }
 0xbcd   :  { %1650 = vmatpush3.bf16.msra.mxu1 %v1883_v8 }
 0xbce   :  { %1651 = vmatprep.subr.bf16.mxu1 %v1820_v0 }
 0xbd1   :  { %1652 = vmatpush3.bf16.msra.mxu1 %v1891_v10 }
 0xbd2   :  { %1653 = vmatprep.subr.bf16.mxu1 %v1820_v0 }
 0xbd5   :  { %1654 = vmatpush3.bf16.msra.mxu1 %v1899_v12 }
 0xbd6   :  { %1655 = vmatprep.subr.bf16.mxu1 %v1820_v0 }
 0xbd9   :  { %1656 = vmatpush3.bf16.msra.mxu1 %v1907_v14 }
 0xbda   :  { %1657 = vmatprep.subr.bf16.mxu1 %v1820_v0 }
 0xbdd   :  { %1658 = vmatpush3.bf16.msra.mxu1 %v1912_v16 }
 0xbde   :  { %1659 = vmatprep.subr.bf16.mxu1 %v1820_v0 }
 0xbe1   :  { %1660 = vmatpush3.bf16.msra.mxu1 %v1936_v17 }
 0xbe2   :  { %1685 = vmatprep.subr.bf16.mxu1 %v1820_v0 }
 0xc84   :  { %v889_v40 = vpop.f32.mrf.mxu1 }
 0xc85   :  { %v896_v41 = vadd.f32 %v895_v39, %v889_v40  ;;  %v902_v42 = vpack.c.bf16 %v889_v40, %v889_v40 }
 0xc86   :  { %v1623_v43 = vpop.f32.mrf.mxu1 }
 0xc87   :  { %vm897_vm8 = vcmp.ge.f32.partialorder %v896_v41, 0.5  ;;  %1642 = vmatmul.mubr.bf16.vlgmr.msra.gmra.mxu0 %v902_v42 }
 0xc88   :  { %v1122_v44 = vsel %vm897_vm8, 1.0, %v1820_v0  ;;  %v892_v45 = vpop.f32.mrf.mxu1  ;;  %1666 = vmatpush3.bf16.msra.mxu0 %v1858_v1  ;;  %1681 = vmatprep.mubr.msk.bf16.mxu0 %vm1821_vm0, %v1820_v0 }
 0xc89   :  { %v900_v46 = vadd.f32 %v1122_v44, %v810_v30  ;;  %1667 = vmatprep.subr.bf16.mxu0 %v1820_v0 }
 0xc8a   :  { %v1624_v47 = vpop.f32.mrf.mxu1 }
 0xc8c   :  { %1668 = vmatpush3.bf16.msra.mxu0 %v1861_v2 }
 0xc8d   :  { %1669 = vmatprep.subr.bf16.mxu0 %v1820_v0 }
 0xc90   :  { %1670 = vmatpush3.bf16.msra.mxu0 %v1865_v3 }
 0xc91   :  { %1671 = vmatprep.subr.bf16.mxu0 %v1820_v0 }
 0xc94   :  { %1672 = vmatpush3.bf16.msra.mxu0 %v1871_v5 }
 0xc95   :  { %1673 = vmatprep.subr.bf16.mxu0 %v1820_v0 }
 0xc98   :  { %1674 = vmatpush3.bf16.msra.mxu0 %v1879_v7 }
 0xc99   :  { %1675 = vmatprep.subr.bf16.mxu0 %v1820_v0 }
 0xc9c   :  { %1676 = vmatpush3.bf16.msra.mxu0 %v1887_v9 }
 0xc9d   :  { %1677 = vmatprep.subr.bf16.mxu0 %v1820_v0 }
 0xca0   :  { %1678 = vmatpush3.bf16.msra.mxu0 %v1895_v11 }
 0xca1   :  { %1679 = vmatprep.subr.bf16.mxu0 %v1820_v0 }
 0xca4   :  { %1680 = vmatpush3.bf16.msra.mxu0 %v1903_v13 }
 0xd47   :  { %v937_v1 = vpop.f32.mrf.mxu0 }
 0xd48   :  { %v943_v2 = vmax.f32 %v937_v1, 0.0 }
 0xd49   :  { %v1643_v3 = vpop.f32.mrf.mxu0 }
 0xd4a   :  { %v944_v5 = vpack.c.bf16 %v943_v2, %v943_v2 }
 0xd4b   :  { %v940_v48 = vpop.f32.mrf.mxu0 }
 0xd4c   :  { %1662 = vmatmul.mubr.bf16.vlgmr.msra.gmra.mxu1 %v944_v5 }
 0xd4d   :  { %v1644_v49 = vpop.f32.mrf.mxu0  ;;  %1686 = vmatpush3.bf16.msra.mxu1 %v1868_v4  ;;  %1701 = vmatprep.mubr.msk.bf16.mxu1 %vm1821_vm0, %v1820_v0  ;;  %v901_v4 = vsel %vm897_vm8, 0.0, %v896_v41 }
 0xd4e   :  { %1687 = vmatprep.subr.bf16.mxu1 %v1820_v0 }
 0xd51   :  { %1688 = vmatpush3.bf16.msra.mxu1 %v1875_v6  ;;  %v985_v6 = vmul.f32 0.2, %v901_v4 }
 0xd52   :  { %1689 = vmatprep.subr.bf16.mxu1 %v1820_v0 }
 0xd55   :  { %1690 = vmatpush3.bf16.msra.mxu1 %v1883_v8 }
 0xd56   :  { %1691 = vmatprep.subr.bf16.mxu1 %v1820_v0 }
 0xd59   :  { %1692 = vmatpush3.bf16.msra.mxu1 %v1891_v10 }
 0xd5a   :  { %1693 = vmatprep.subr.bf16.mxu1 %v1820_v0 }
 0xd5d   :  { %1694 = vmatpush3.bf16.msra.mxu1 %v1899_v12 }
 0xd5e   :  { %1695 = vmatprep.subr.bf16.mxu1 %v1820_v0 }
 0xd61   :  { %1696 = vmatpush3.bf16.msra.mxu1 %v1907_v14 }
 0xd62   :  { %1697 = vmatprep.subr.bf16.mxu1 %v1820_v0 }
 0xd65   :  { %1698 = vmatpush3.bf16.msra.mxu1 %v1912_v16 }
 0xd66   :  { %1699 = vmatprep.subr.bf16.mxu1 %v1820_v0 }
 0xd69   :  { %1700 = vmatpush3.bf16.msra.mxu1 %v1936_v17 }
 0xe0c   :  { %v979_v7 = vpop.f32.mrf.mxu1 }
 0xe0d   :  { %v986_v8 = vadd.f32 %v985_v6, %v979_v7  ;;  %v992_v9 = vpack.c.bf16 %v979_v7, %v979_v7 }
 0xe0e   :  { %v1663_v10 = vpop.f32.mrf.mxu1 }
 0xe0f   :  { %1682 = vmatmul.mubr.bf16.vlgmr.msra.gmra.mxu0 %v992_v9  ;;  %vm987_vm9 = vcmp.ge.f32.partialorder %v986_v8, 0.5 }
 0xe10   :  { %v982_v11 = vpop.f32.mrf.mxu1  ;;  %v1123_v12 = vsel %vm987_vm9, 1.0, %v1820_v0  ;;  %v991_v54 = vsel %vm987_vm9, 0.0, %v986_v8 }
 0xe11   :  { %v990_v13 = vadd.f32 %v1123_v12, %v900_v46  ;;  %v1075_v55 = vmul.f32 0.2, %v991_v54 }
 0xe12   :  { %v1664_v14 = vpop.f32.mrf.mxu1 }
 0xecf   :  { %v1027_v50 = vpop.f32.mrf.mxu0 }
 0xed0   :  { %v1033_v16 = vmax.f32 %v1027_v50, 0.0 }
 0xed1   :  { %v1683_v51 = vpop.f32.mrf.mxu0 }
 0xed2   :  { %v1034_v52 = vpack.c.bf16 %v1033_v16, %v1033_v16 }
 0xed3   :  { %v1030_v53 = vpop.f32.mrf.mxu0 }
 0xed4   :  { %1702 = vmatmul.mubr.bf16.vlgmr.msra.gmra.mxu1 %v1034_v52 }
 0xed5   :  { %v1684_v17 = vpop.f32.mrf.mxu0 }
 0xf94   :  { %v1069_v56 = vpop.f32.mrf.mxu1 }
 0xf95   :  { %v1076_v57 = vadd.f32 %v1075_v55, %v1069_v56 }
 0xf96   :  { %v1703_v58 = vpop.f32.mrf.mxu1 }
 0xf97   :  { %vm1077_vm10 = vcmp.ge.f32.partialorder %v1076_v57, 0.5 }
 0xf98   :  { %v1124_v59 = vsel %vm1077_vm10, 1.0, %v1820_v0  ;;  %v1072_v60 = vpop.f32.mrf.mxu1 }
 0xf99   :  { %v1080_v61 = vadd.f32 %v1124_v59, %v990_v13 }
 0xf9a   :  { %v1704_v62 = vpop.f32.mrf.mxu1 }
 0xf9b   :  { %v1081_v63 = vmul.f32 0.1, %v1080_v61 }
 0xf9d   :  { %1082 = vst [vmem:[#allocation8] sm:$0xff] %v1081_v63 }
 0xf9e   :  { %1800 = shalt.err (!%p1797_p5)
}
 0xf9f   :  { %1092 = dma.vmem_to_hbm [thread:$0]  %s1090_s2, 128, %s2274_s3, [#allocation4]  }
 0xfa0   :  { %1813 = dma.done.wait [#allocation4], 128  }
 0xfa1   :  { %1814 = vsyncadd [#allocation4], 4294967168 }
 0xfa2   :  { %1096 = vsyncpa [#allocation3], 1 }
 0xfa3   :  { %1097 = vsyncpa [#allocation6], 1 }
 0xfa4   :  { %1098 = vsyncpa [#allocation4], 1 }

</bundles_post_ra>
